<compile_context>
chip_gen: v7x
topology: tpu7x:2x2x1
jax: 0.10.0
libtpu: 0.0.40
codegen_flags: <defaults>
</compile_context>

<pallas_src>
import functools

import jax
import jax.numpy as jnp
from jax import lax
from jax.experimental import pallas as pl
from jax.experimental.pallas import tpu as pltpu


def _round_up(a, b):
    return (a + b - 1) // b * b


# --------------------------- Phase 1: conv + partial BN stats ---------------------------
def conv_stats_kernel(xcol_ref, w_ref, y_ref, stats_ref):
    # xcol_ref: [TM, K] (bf16)   w_ref: [K, TN] (bf16)
    # y_ref:    [TM, TN] (f32)   stats_ref: [1, 2, TN] (f32) per-tile partial sums
    y = jnp.dot(xcol_ref[...], w_ref[...], preferred_element_type=jnp.float32)
    y_ref[...] = y
    s = jnp.sum(y, axis=0, keepdims=True)        # [1, TN]
    ss = jnp.sum(y * y, axis=0, keepdims=True)   # [1, TN]
    stats_ref[...] = jnp.concatenate([s, ss], axis=0)[None]   # [1, 2, TN]


# --------------------------- Phase 2: BN (folded scale/shift) + ReLU ---------------------------
def bn_relu_kernel(y_ref, scale_ref, shift_ref, o_ref):
    # y_ref: [TM, TN] f32, scale/shift: [1, TN] f32 (broadcast over rows)
    o_ref[...] = jnp.maximum(y_ref[...] * scale_ref[...] + shift_ref[...], 0.0)


def conv2d_bn_act(x_nchw, weight_oihw, gamma, beta, *, stride=1, padding=0,
                  eps=1e-5, tm=256, compute_dtype=jnp.bfloat16):
    """PyTorch-equivalent forward. x_nchw: [N, Cin, H, W] -> [N, Cout, Ho, Wo]."""
    N, Cin, H, W = x_nchw.shape
    Cout, Cin_w, kh, kw = weight_oihw.shape
    assert Cin == Cin_w
    Ho = (H + 2 * padding - kh) // stride + 1
    Wo = (W + 2 * padding - kw) // stride + 1

    M = N * Ho * Wo
    K = kh * kw * Cin
    Cp = _round_up(Cout, 128)                 # lane-dense channel dim
    TN = 128                                  # channel block (one vreg lane width)
    num_cblk = Cp // TN
    TM = min(tm, _round_up(M, 8))             # rows per tile (multiple of 8)
    M_pad = _round_up(M, TM)
    num_tiles = M_pad // TM

    # ---- XLA-side layout plumbing: NCHW -> NHWC, spatial pad, im2col, dtype casts ----
    x = jnp.transpose(x_nchw, (0, 2, 3, 1)).astype(compute_dtype)      # [N,H,W,Cin]
    xp = jnp.pad(x, ((0, 0), (padding, padding), (padding, padding), (0, 0)))
    cols = []
    for ki in range(kh):
        for kj in range(kw):
            cols.append(lax.slice(
                xp,
                (0, ki, kj, 0),
                (N, ki + (Ho - 1) * stride + 1, kj + (Wo - 1) * stride + 1, Cin),
                (1, stride, stride, 1)))                                # [N,Ho,Wo,Cin]
    x_col = jnp.concatenate(cols, axis=-1).reshape(M, K)                # [M, kh*kw*Cin]
    # Zero-pad extra rows: they contribute 0 to sum / sum_sq, so BN stats stay exact
    # as long as we divide by the true M below.
    x_col = jnp.pad(x_col, ((0, M_pad - M), (0, 0)))

    # Weight OIHW -> [kh*kw*Cin, Cout], channel-pad to 128 (padded channels are zero).
    w = jnp.transpose(weight_oihw, (2, 3, 1, 0)).reshape(K, Cout).astype(compute_dtype)
    w = jnp.pad(w, ((0, 0), (0, Cp - Cout)))

    cparams = pltpu.CompilerParams(dimension_semantics=("parallel", "parallel"),
                                   vmem_limit_bytes=32 * 1024 * 1024)

    # ---- Phase 1: one fused MXU matmul per tile + per-tile partial stats ----
    y_conv, stats = pl.pallas_call(
        conv_stats_kernel,
        out_shape=(jax.ShapeDtypeStruct((M_pad, Cp), jnp.float32),
                   jax.ShapeDtypeStruct((num_tiles, 2, Cp), jnp.float32)),
        grid=(num_tiles, num_cblk),
        in_specs=[pl.BlockSpec((TM, K), lambda i, j: (i, 0)),
                  pl.BlockSpec((K, TN), lambda i, j: (0, j))],
        out_specs=(pl.BlockSpec((TM, TN), lambda i, j: (i, j)),
                   pl.BlockSpec((1, 2, TN), lambda i, j: (i, 0, j))),
        compiler_params=cparams,
    )(x_col, w)

    # ---- Finalize BN stats (tiny XLA reduce) and fold gamma/beta into scale/shift ----
    sums = jnp.sum(stats, axis=0)                       # [2, Cp]
    mean = sums[0] / M                                  # true M (padded rows are zero)
    var = sums[1] / M - mean * mean                     # single-pass E[x^2] - E[x]^2
    inv_std = lax.rsqrt(var + eps)
    gamma_p = jnp.pad(gamma.astype(jnp.float32), (0, Cp - Cout), constant_values=1.0)
    beta_p = jnp.pad(beta.astype(jnp.float32), (0, Cp - Cout))
    scale = (gamma_p * inv_std).reshape(1, Cp)
    shift = (beta_p - mean * gamma_p * inv_std).reshape(1, Cp)

    # ---- Phase 2: normalize + ReLU over lane-dense tiles ----
    y_out = pl.pallas_call(
        bn_relu_kernel,
        out_shape=jax.ShapeDtypeStruct((M_pad, Cp), jnp.float32),
        grid=(num_tiles, num_cblk),
        in_specs=[pl.BlockSpec((TM, TN), lambda i, j: (i, j)),
                  pl.BlockSpec((1, TN), lambda i, j: (0, j)),
                  pl.BlockSpec((1, TN), lambda i, j: (0, j))],
        out_specs=pl.BlockSpec((TM, TN), lambda i, j: (i, j)),
        compiler_params=cparams,
    )(y_conv, scale, shift)

    # ---- XLA-side un-padding / layout back to NCHW ----
    y = y_out[:M, :Cout].reshape(N, Ho, Wo, Cout)
    return jnp.transpose(y, (0, 3, 1, 2))


def _reference(x_nchw, weight_oihw, gamma, beta, *, stride, padding, eps, compute_dtype):
    """Pure-JAX reference with identical semantics (inputs quantized the same way)."""
    xq = x_nchw.astype(compute_dtype).astype(jnp.float32)
    wq = weight_oihw.astype(compute_dtype).astype(jnp.float32)
    y = lax.conv_general_dilated(
        xq, wq, window_strides=(stride, stride),
        padding=[(padding, padding), (padding, padding)],
        dimension_numbers=("NCHW", "OIHW", "NCHW"),
        precision=lax.Precision.HIGHEST)
    mean = jnp.mean(y, axis=(0, 2, 3), keepdims=True)
    var = jnp.mean((y - mean) ** 2, axis=(0, 2, 3), keepdims=True)
    y = (y - mean) * lax.rsqrt(var + eps)
    y = y * gamma.reshape(1, -1, 1, 1) + beta.reshape(1, -1, 1, 1)
    return jnp.maximum(y, 0.0)


if __name__ == "__main__":
    # Conv2dBnAct(in_channels=4, out_channels=8, kernel_size=3, padding=1, stride=1)
    N, Cin, H, W = 2, 4, 16, 16
    Cout, Ksz, padding, stride = 8, 3, 1, 1
    eps = 1e-5

    key = jax.random.PRNGKey(0)
    kx, kw_, kg, kb = jax.random.split(key, 4)
    x = jax.random.normal(kx, (N, Cin, H, W), jnp.float32)
    weight = jax.random.normal(kw_, (Cout, Cin, Ksz, Ksz), jnp.float32) * 0.1
    gamma = 1.0 + 0.1 * jax.random.normal(kg, (Cout,), jnp.float32)   # BN weight
    beta = 0.1 * jax.random.normal(kb, (Cout,), jnp.float32)          # BN bias

    fwd = jax.jit(functools.partial(conv2d_bn_act, stride=stride, padding=padding,
                                    eps=eps, tm=256, compute_dtype=jnp.bfloat16))
    out = jax.block_until_ready(fwd(x, weight, gamma, beta))

    ref = _reference(x, weight, gamma, beta, stride=stride, padding=padding, eps=eps,
                     compute_dtype=jnp.bfloat16)
    assert out.shape == (N, Cout, H, W)
    err = float(jnp.max(jnp.abs(out - ref)))
    assert jnp.allclose(out, ref, atol=1e-3, rtol=1e-3), err

    print("KERNEL_OK")
</pallas_src>

<mosaic_0001>
module attributes {stable_mosaic.version = 11 : i64} {
  func.func @conv_stats_kernel(%arg0: i32, %arg1: i32, %arg2: memref<256x36xbf16, #tpu.memory_space<vmem>>, %arg3: memref<36x128xbf16, #tpu.memory_space<vmem>>, %arg4: memref<256x128xf32, #tpu.memory_space<vmem>>, %arg5: memref<1x2x128xf32, #tpu.memory_space<vmem>>) attributes {dimension_semantics = [#tpu.dimension_semantics<parallel>, #tpu.dimension_semantics<parallel>], iteration_bounds = array<i64: 2, 1>, scalar_prefetch = 0 : i64, scratch_operands = 0 : i64, tpu.core_type = #tpu.core_type<tc>, window_params = [{transform_indices = @transform_0, window_bounds = array<i64: 256, 36>}, {transform_indices = @transform_1, window_bounds = array<i64: 36, 128>}, {transform_indices = @transform_2, window_bounds = array<i64: 256, 128>}, {transform_indices = @transform_3, window_bounds = array<i64: 1, 2, 128>}]} {
    %c0 = arith.constant 0 : index
    %c0_0 = arith.constant 0 : index
    %0 = vector.load %arg2[%c0, %c0_0] : memref<256x36xbf16, #tpu.memory_space<vmem>>, vector<256x36xbf16>
    %c0_1 = arith.constant 0 : index
    %c0_2 = arith.constant 0 : index
    %1 = vector.load %arg3[%c0_1, %c0_2] : memref<36x128xbf16, #tpu.memory_space<vmem>>, vector<36x128xbf16>
    %cst = arith.constant dense<0.000000e+00> : vector<256x128xf32>
    %2 = tpu.matmul %0, %1, %cst {dimension_numbers = #tpu.dot_dimension_numbers<[1], [0], [0], [1], [0, 0, 1, 1], [], []>} : vector<256x36xbf16>, vector<36x128xbf16>, vector<256x128xf32> -> vector<256x128xf32>
    %c0_3 = arith.constant 0 : index
    %c0_4 = arith.constant 0 : index
    %3 = vector.load %arg4[%c0_3, %c0_4] : memref<256x128xf32, #tpu.memory_space<vmem>>, vector<256x128xf32>
    tpu.vector_store %arg4[%c0_3, %c0_4], %2 {strides = array<i32>} : memref<256x128xf32, #tpu.memory_space<vmem>>, vector<256x128xf32>,
    %cst_5 = arith.constant dense<0.000000e+00> : vector<128xf32>
    %4 = vector.multi_reduction <add>, %2, %cst_5 [0] : vector<256x128xf32> to vector<128xf32>
    %5 = vector.shape_cast %4 : vector<128xf32> to vector<1x128xf32>
    %6 = arith.mulf %2, %2 : vector<256x128xf32>
    %cst_6 = arith.constant dense<0.000000e+00> : vector<128xf32>
    %7 = vector.multi_reduction <add>, %6, %cst_6 [0] : vector<256x128xf32> to vector<128xf32>
    %8 = vector.shape_cast %7 : vector<128xf32> to vector<1x128xf32>
    %9 = tpu.concatenate %5, %8 in 0 : vector<1x128xf32>, vector<1x128xf32> -> vector<2x128xf32>
    %10 = vector.shape_cast %9 : vector<2x128xf32> to vector<1x2x128xf32>
    %c0_7 = arith.constant 0 : index
    %c0_8 = arith.constant 0 : index
    %c0_9 = arith.constant 0 : index
    %11 = vector.load %arg5[%c0_7, %c0_8, %c0_9] : memref<1x2x128xf32, #tpu.memory_space<vmem>>, vector<1x2x128xf32>
    tpu.vector_store %arg5[%c0_7, %c0_8, %c0_9], %10 {strides = array<i32>} : memref<1x2x128xf32, #tpu.memory_space<vmem>>, vector<1x2x128xf32>,
    return
  }
  func.func @transform_0(%arg0: i32, %arg1: i32) -> (i32, i32) {
    %c0_i32 = arith.constant 0 : i32
    %c0_i32_0 = arith.constant 0 : i32
    return %arg0, %c0_i32 : i32, i32
  }
  func.func @transform_1(%arg0: i32, %arg1: i32) -> (i32, i32) {
    %c0_i32 = arith.constant 0 : i32
    %c0_i32_0 = arith.constant 0 : i32
    return %c0_i32, %arg1 : i32, i32
  }
  func.func @transform_2(%arg0: i32, %arg1: i32) -> (i32, i32) {
    %c0_i32 = arith.constant 0 : i32
    return %arg0, %arg1 : i32, i32
  }
  func.func @transform_3(%arg0: i32, %arg1: i32) -> (i32, i32, i32) {
    %c0_i32 = arith.constant 0 : i32
    %c0_i32_0 = arith.constant 0 : i32
    return %arg0, %c0_i32, %arg1 : i32, i32, i32
  }
}

module attributes {stable_mosaic.version = 11 : i64} {
  func.func @bn_relu_kernel(%arg0: i32, %arg1: i32, %arg2: memref<256x128xf32, #tpu.memory_space<vmem>>, %arg3: memref<1x128xf32, #tpu.memory_space<vmem>>, %arg4: memref<1x128xf32, #tpu.memory_space<vmem>>, %arg5: memref<256x128xf32, #tpu.memory_space<vmem>>) attributes {dimension_semantics = [#tpu.dimension_semantics<parallel>, #tpu.dimension_semantics<parallel>], iteration_bounds = array<i64: 2, 1>, scalar_prefetch = 0 : i64, scratch_operands = 0 : i64, tpu.core_type = #tpu.core_type<tc>, window_params = [{transform_indices = @transform_0, window_bounds = array<i64: 256, 128>}, {transform_indices = @transform_1, window_bounds = array<i64: 1, 128>}, {transform_indices = @transform_2, window_bounds = array<i64: 1, 128>}, {transform_indices = @transform_3, window_bounds = array<i64: 256, 128>}]} {
    %c0 = arith.constant 0 : index
    %c0_0 = arith.constant 0 : index
    %0 = vector.load %arg2[%c0, %c0_0] : memref<256x128xf32, #tpu.memory_space<vmem>>, vector<256x128xf32>
    %c0_1 = arith.constant 0 : index
    %c0_2 = arith.constant 0 : index
    %1 = vector.load %arg3[%c0_1, %c0_2] : memref<1x128xf32, #tpu.memory_space<vmem>>, vector<1x128xf32>
    %2 = vector.broadcast %1 : vector<1x128xf32> to vector<256x128xf32>
    %3 = arith.mulf %0, %2 : vector<256x128xf32>
    %c0_3 = arith.constant 0 : index
    %c0_4 = arith.constant 0 : index
    %4 = vector.load %arg4[%c0_3, %c0_4] : memref<1x128xf32, #tpu.memory_space<vmem>>, vector<1x128xf32>
    %5 = vector.broadcast %4 : vector<1x128xf32> to vector<256x128xf32>
    %6 = arith.addf %3, %5 : vector<256x128xf32>
    %cst = arith.constant 0.000000e+00 : f32
    %7 = vector.broadcast %cst : f32 to vector<256x128xf32>
    %8 = arith.maximumf %6, %7 : vector<256x128xf32>
    %c0_5 = arith.constant 0 : index
    %c0_6 = arith.constant 0 : index
    %9 = vector.load %arg5[%c0_5, %c0_6] : memref<256x128xf32, #tpu.memory_space<vmem>>, vector<256x128xf32>
    tpu.vector_store %arg5[%c0_5, %c0_6], %8 {strides = array<i32>} : memref<256x128xf32, #tpu.memory_space<vmem>>, vector<256x128xf32>,
    return
  }
  func.func @transform_0(%arg0: i32, %arg1: i32) -> (i32, i32) {
    %c0_i32 = arith.constant 0 : i32
    return %arg0, %arg1 : i32, i32
  }
  func.func @transform_1(%arg0: i32, %arg1: i32) -> (i32, i32) {
    %c0_i32 = arith.constant 0 : i32
    %c0_i32_0 = arith.constant 0 : i32
    return %c0_i32, %arg1 : i32, i32
  }
  func.func @transform_2(%arg0: i32, %arg1: i32) -> (i32, i32) {
    %c0_i32 = arith.constant 0 : i32
    %c0_i32_0 = arith.constant 0 : i32
    return %c0_i32, %arg1 : i32, i32
  }
  func.func @transform_3(%arg0: i32, %arg1: i32) -> (i32, i32) {
    %c0_i32 = arith.constant 0 : i32
    return %arg0, %arg1 : i32, i32
  }
}

</mosaic_0001>

<bundles_post_ra>
// kernel: conv2d_bn_act.3
= control target key start
LH: loop header
LB: loop body
LE: loop exit
PB: predicated region body
PF: predicated region fallthrough
CT: control target
= control target key end

     0   :  { %s592_s12 = smov 0   ;;  %s594_s13 = smov 0   ;;  %s767_s0 = inlined_call_operand.vmem [shape: f32[512,128], index: 0, kind: input, shape index: {}]   ;;  %s768_s1 = inlined_call_operand.vmem [shape: f32[1,128], index: 1, kind: input, shape index: {}]   ;;  %s769_s2 = inlined_call_operand.vmem [shape: f32[1,128], index: 2, kind: input, shape index: {}]   ;;  %s770_s3 = inlined_call_operand.vmem [shape: f32[512,128], index: 3, kind: output, shape index: {}]  }
   0x1   :  { %s596_s14 = smov 0  }
   0x2 LB: > { %s25_s15 = sadd.s32 1, %s566_s13  ;;  %p515_p0 = scmp.ge.s32.totalorder %s570_s14, 1  ;;  %s570_s14 = sphi %s596_s14, %s13_s14   ;;  %s566_s13 = sphi %s594_s13, %s772_s13   ;;  %s562_s12 = sphi %s592_s12, %s771_s12  }
   0x3   : > { %p27_p1 = scmp.ge.s32.totalorder %s25_s15, 2  ;;  %p173_p2 = scmp.lt.s32.totalorder %s570_s14, 3 }
   0x5   : > { %s774_s15 = smov (%p27_p1, %s25_s15), 0  ;;  %p174_p3 = pnand %p515_p0, %p173_p2 }
   0x6   : > { %s516_s16 = sshll.u32 (!%p174_p3), %s562_s12, 5  ;;  %v613_v0 = vld [vmem:[%s768_s1] ss:$0 sm:$0xff] (!%p174_p3) }
   0x7   : > { %177 = sbr.rel (%p174_p3) target bundleno = 47 (0x2f), region = 32  ;;  %p210_p4 = scmp.lt.s32.totalorder (!%p174_p3), %s516_s16, 63  ;;  %v623_v1 = vld [vmem:[%s769_s2] ss:$0 sm:$0xff] (!%p174_p3) }
   0xe   : > { %s776_s16 = smov (!%p210_p4, %s516_s16), 63 }
   0xf   : > { %s517_s17 = sshll.u32 %s776_s16, 3 }
  0x10   : > { %s618_s22 = scalar_lea.vmem %s767_s0, %s517_s17  ;;  %s646_s27 = scalar_lea.vmem %s770_s3, %s517_s17 }
  0x11   : > { %v233_v2 = vld [vmem:[%s618_s22] sm:$0xff]  ;;  %v234_v3 = vld [vmem:[%s618_s22 + $0x8] sm:$0xff]  ;;  %v235_v4 = vld [vmem:[%s618_s22 + $0x10] sm:$0xff] }
  0x12   : > { %v272_v5 = vmul.f32 %v613_v0, %v233_v2  ;;  %v273_v6 = vmul.f32 %v613_v0, %v234_v3  ;;  %v274_v7 = vmul.f32 %v613_v0, %v235_v4  ;;  %v236_v8 = vld [vmem:[%s618_s22 + $0x18] sm:$0xff]  ;;  %v237_v9 = vld [vmem:[%s618_s22 + $0x20] sm:$0xff]  ;;  %v238_v10 = vld [vmem:[%s618_s22 + $0x28] sm:$0xff] }
  0x13   : > { %v275_v11 = vmul.f32 %v613_v0, %v236_v8  ;;  %v276_v12 = vmul.f32 %v613_v0, %v237_v9  ;;  %v277_v13 = vmul.f32 %v613_v0, %v238_v10  ;;  %v239_v14 = vld [vmem:[%s618_s22 + $0x30] sm:$0xff]  ;;  %v240_v15 = vld [vmem:[%s618_s22 + $0x38] sm:$0xff]  ;;  %v241_v24 = vld [vmem:[%s618_s22 + $0x40] sm:$0xff] }
  0x14   : > { %v311_v16 = vadd.f32 %v623_v1, %v272_v5  ;;  %v312_v17 = vadd.f32 %v623_v1, %v273_v6  ;;  %v313_v18 = vadd.f32 %v623_v1, %v274_v7  ;;  %v278_v19 = vmul.f32 %v613_v0, %v239_v14  ;;  %v242_v25 = vld [vmem:[%s618_s22 + $0x48] sm:$0xff]  ;;  %v243_v26 = vld [vmem:[%s618_s22 + $0x50] sm:$0xff]  ;;  %v244_v31 = vld [vmem:[%s618_s22 + $0x58] sm:$0xff] }
  0x15   : > { %v314_v20 = vadd.f32 %v623_v1, %v275_v11  ;;  %v315_v21 = vadd.f32 %v623_v1, %v276_v12  ;;  %v316_v22 = vadd.f32 %v623_v1, %v277_v13  ;;  %v279_v23 = vmul.f32 %v613_v0, %v240_v15  ;;  %v245_v32 = vld [vmem:[%s618_s22 + $0x60] sm:$0xff]  ;;  %v246_v33 = vld [vmem:[%s618_s22 + $0x68] sm:$0xff]  ;;  %v247_v38 = vld [vmem:[%s618_s22 + $0x70] sm:$0xff] }
  0x16   : > { %v343_v27 = vmax.f32 %v311_v16, 0.0  ;;  %v344_v28 = vmax.f32 %v312_v17, 0.0  ;;  %v345_v29 = vmax.f32 %v313_v18, 0.0  ;;  %v317_v30 = vadd.f32 %v623_v1, %v278_v19  ;;  %v248_v43 = vld [vmem:[%s618_s22 + $0x78] sm:$0xff]  ;;  %v249_v56 = vld [vmem:[%s618_s22 + $0x80] sm:$0xff]  ;;  %v250_v57 = vld [vmem:[%s618_s22 + $0x88] sm:$0xff] }
  0x17   : > { %v346_v34 = vmax.f32 %v314_v20, 0.0  ;;  %v347_v35 = vmax.f32 %v315_v21, 0.0  ;;  %v348_v36 = vmax.f32 %v316_v22, 0.0  ;;  %v318_v37 = vadd.f32 %v623_v1, %v279_v23  ;;  %v251_v58 = vld [vmem:[%s618_s22 + $0x90] sm:$0xff]  ;;  %v252_v63 = vld [vmem:[%s618_s22 + $0x98] sm:$0xff]  ;;  %v253_v2 = vld [vmem:[%s618_s22 + $0xa0] sm:$0xff] }
  0x18   : > { %375 = vst [vmem:[%s646_s27] sm:$0xff] %v343_v27  ;;  %376 = vst [vmem:[%s646_s27 + $0x8] sm:$0xff] %v344_v28  ;;  %v349_v39 = vmax.f32 %v317_v30, 0.0  ;;  %v280_v40 = vmul.f32 %v613_v0, %v241_v24  ;;  %v281_v41 = vmul.f32 %v613_v0, %v242_v25  ;;  %v282_v42 = vmul.f32 %v613_v0, %v243_v26  ;;  %v254_v3 = vld [vmem:[%s618_s22 + $0xa8] sm:$0xff]  ;;  %v255_v8 = vld [vmem:[%s618_s22 + $0xb0] sm:$0xff] }
  0x19   : > { %377 = vst [vmem:[%s646_s27 + $0x10] sm:$0xff] %v345_v29  ;;  %378 = vst [vmem:[%s646_s27 + $0x18] sm:$0xff] %v346_v34  ;;  %v350_v44 = vmax.f32 %v318_v37, 0.0  ;;  %v283_v45 = vmul.f32 %v613_v0, %v244_v31  ;;  %v284_v46 = vmul.f32 %v613_v0, %v245_v32  ;;  %v285_v47 = vmul.f32 %v613_v0, %v246_v33  ;;  %v256_v13 = vld [vmem:[%s618_s22 + $0xb8] sm:$0xff]  ;;  %v257_v26 = vld [vmem:[%s618_s22 + $0xc0] sm:$0xff] }
  0x1a   : > { %379 = vst [vmem:[%s646_s27 + $0x20] sm:$0xff] %v347_v35  ;;  %380 = vst [vmem:[%s646_s27 + $0x28] sm:$0xff] %v348_v36  ;;  %v319_v48 = vadd.f32 %v623_v1, %v280_v40  ;;  %v320_v49 = vadd.f32 %v623_v1, %v281_v41  ;;  %v321_v50 = vadd.f32 %v623_v1, %v282_v42  ;;  %v258_v27 = vld [vmem:[%s618_s22 + $0xc8] sm:$0xff]  ;;  %v259_v28 = vld [vmem:[%s618_s22 + $0xd0] sm:$0xff] }
  0x1b   : > { %381 = vst [vmem:[%s646_s27 + $0x30] sm:$0xff] %v349_v39  ;;  %v286_v51 = vmul.f32 %v613_v0, %v247_v38  ;;  %382 = vst [vmem:[%s646_s27 + $0x38] sm:$0xff] %v350_v44  ;;  %v322_v52 = vadd.f32 %v623_v1, %v283_v45  ;;  %v323_v53 = vadd.f32 %v623_v1, %v284_v46  ;;  %v260_v33 = vld [vmem:[%s618_s22 + $0xd8] sm:$0xff]  ;;  %v261_v34 = vld [vmem:[%s618_s22 + $0xe0] sm:$0xff] }
  0x1c   : > { %v324_v54 = vadd.f32 %v623_v1, %v285_v47  ;;  %v287_v55 = vmul.f32 %v613_v0, %v248_v43  ;;  %v351_v59 = vmax.f32 %v319_v48, 0.0  ;;  %v352_v60 = vmax.f32 %v320_v49, 0.0  ;;  %v262_v35 = vld [vmem:[%s618_s22 + $0xe8] sm:$0xff]  ;;  %v263_v40 = vld [vmem:[%s618_s22 + $0xf0] sm:$0xff]  ;;  %v264_v45 = vld [vmem:[%s618_s22 + $0xf8] sm:$0xff] }
  0x1d   : > { %v353_v61 = vmax.f32 %v321_v50, 0.0  ;;  %v325_v62 = vadd.f32 %v623_v1, %v286_v51  ;;  %v354_v4 = vmax.f32 %v322_v52, 0.0  ;;  %v355_v5 = vmax.f32 %v323_v53, 0.0 }
  0x1e   : > { %v356_v6 = vmax.f32 %v324_v54, 0.0  ;;  %v326_v7 = vadd.f32 %v623_v1, %v287_v55  ;;  %383 = vst [vmem:[%s646_s27 + $0x40] sm:$0xff] %v351_v59  ;;  %384 = vst [vmem:[%s646_s27 + $0x48] sm:$0xff] %v352_v60  ;;  %v288_v10 = vmul.f32 %v613_v0, %v249_v56  ;;  %v289_v11 = vmul.f32 %v613_v0, %v250_v57 }
  0x1f   : > { %385 = vst [vmem:[%s646_s27 + $0x50] sm:$0xff] %v353_v61  ;;  %v357_v9 = vmax.f32 %v325_v62, 0.0  ;;  %v290_v12 = vmul.f32 %v613_v0, %v251_v58  ;;  %386 = vst [vmem:[%s646_s27 + $0x58] sm:$0xff] %v354_v4  ;;  %v291_v15 = vmul.f32 %v613_v0, %v252_v63  ;;  %v292_v16 = vmul.f32 %v613_v0, %v253_v2 }
  0x20   : > { %387 = vst [vmem:[%s646_s27 + $0x60] sm:$0xff] %v355_v5  ;;  %388 = vst [vmem:[%s646_s27 + $0x68] sm:$0xff] %v356_v6  ;;  %v358_v14 = vmax.f32 %v326_v7, 0.0  ;;  %v293_v17 = vmul.f32 %v613_v0, %v254_v3  ;;  %v327_v18 = vadd.f32 %v623_v1, %v288_v10  ;;  %v328_v19 = vadd.f32 %v623_v1, %v289_v11 }
  0x21   : > { %389 = vst [vmem:[%s646_s27 + $0x70] sm:$0xff] %v357_v9  ;;  %v329_v20 = vadd.f32 %v623_v1, %v290_v12  ;;  %v294_v21 = vmul.f32 %v613_v0, %v255_v8  ;;  %v330_v22 = vadd.f32 %v623_v1, %v291_v15  ;;  %v331_v23 = vadd.f32 %v623_v1, %v292_v16 }
  0x22   : > { %390 = vst [vmem:[%s646_s27 + $0x78] sm:$0xff] %v358_v14  ;;  %v332_v24 = vadd.f32 %v623_v1, %v293_v17  ;;  %v295_v25 = vmul.f32 %v613_v0, %v256_v13  ;;  %v359_v29 = vmax.f32 %v327_v18, 0.0  ;;  %v360_v30 = vmax.f32 %v328_v19, 0.0 }
  0x23   : > { %v361_v31 = vmax.f32 %v329_v20, 0.0  ;;  %v333_v32 = vadd.f32 %v623_v1, %v294_v21  ;;  %v362_v36 = vmax.f32 %v330_v22, 0.0  ;;  %v363_v37 = vmax.f32 %v331_v23, 0.0 }
  0x24   : > { %v364_v38 = vmax.f32 %v332_v24, 0.0  ;;  %v334_v39 = vadd.f32 %v623_v1, %v295_v25  ;;  %391 = vst [vmem:[%s646_s27 + $0x80] sm:$0xff] %v359_v29  ;;  %392 = vst [vmem:[%s646_s27 + $0x88] sm:$0xff] %v360_v30  ;;  %v296_v42 = vmul.f32 %v613_v0, %v257_v26  ;;  %v297_v43 = vmul.f32 %v613_v0, %v258_v27 }
  0x25   : > { %393 = vst [vmem:[%s646_s27 + $0x90] sm:$0xff] %v361_v31  ;;  %v365_v41 = vmax.f32 %v333_v32, 0.0  ;;  %v298_v44 = vmul.f32 %v613_v0, %v259_v28  ;;  %394 = vst [vmem:[%s646_s27 + $0x98] sm:$0xff] %v362_v36  ;;  %v299_v47 = vmul.f32 %v613_v0, %v260_v33  ;;  %v300_v48 = vmul.f32 %v613_v0, %v261_v34 }
  0x26   : > { %395 = vst [vmem:[%s646_s27 + $0xa0] sm:$0xff] %v363_v37  ;;  %396 = vst [vmem:[%s646_s27 + $0xa8] sm:$0xff] %v364_v38  ;;  %v366_v46 = vmax.f32 %v334_v39, 0.0  ;;  %v301_v49 = vmul.f32 %v613_v0, %v262_v35  ;;  %v335_v50 = vadd.f32 %v623_v1, %v296_v42  ;;  %v336_v51 = vadd.f32 %v623_v1, %v297_v43 }
  0x27   : > { %397 = vst [vmem:[%s646_s27 + $0xb0] sm:$0xff] %v365_v41  ;;  %v337_v52 = vadd.f32 %v623_v1, %v298_v44  ;;  %v302_v53 = vmul.f32 %v613_v0, %v263_v40  ;;  %v338_v54 = vadd.f32 %v623_v1, %v299_v47  ;;  %v339_v55 = vadd.f32 %v623_v1, %v300_v48 }
  0x28   : > { %398 = vst [vmem:[%s646_s27 + $0xb8] sm:$0xff] %v366_v46  ;;  %v340_v56 = vadd.f32 %v623_v1, %v301_v49  ;;  %v303_v57 = vmul.f32 %v613_v0, %v264_v45  ;;  %v367_v58 = vmax.f32 %v335_v50, 0.0  ;;  %v368_v59 = vmax.f32 %v336_v51, 0.0 }
  0x29   : > { %v369_v60 = vmax.f32 %v337_v52, 0.0  ;;  %v341_v61 = vadd.f32 %v623_v1, %v302_v53  ;;  %v370_v62 = vmax.f32 %v338_v54, 0.0  ;;  %v371_v63 = vmax.f32 %v339_v55, 0.0 }
  0x2a   : > { %v372_v2 = vmax.f32 %v340_v56, 0.0  ;;  %v342_v3 = vadd.f32 %v623_v1, %v303_v57  ;;  %399 = vst [vmem:[%s646_s27 + $0xc0] sm:$0xff] %v367_v58  ;;  %400 = vst [vmem:[%s646_s27 + $0xc8] sm:$0xff] %v368_v59 }
  0x2b   : > { %401 = vst [vmem:[%s646_s27 + $0xd0] sm:$0xff] %v369_v60  ;;  %v373_v4 = vmax.f32 %v341_v61, 0.0  ;;  %402 = vst [vmem:[%s646_s27 + $0xd8] sm:$0xff] %v370_v62 }
  0x2c   : > { %403 = vst [vmem:[%s646_s27 + $0xe0] sm:$0xff] %v371_v63  ;;  %404 = vst [vmem:[%s646_s27 + $0xe8] sm:$0xff] %v372_v2  ;;  %v374_v0 = vmax.f32 %v342_v3, 0.0 }
  0x2d   : > { %405 = vst [vmem:[%s646_s27 + $0xf0] sm:$0xff] %v373_v4 }
  0x2e   : > { %406 = vst [vmem:[%s646_s27 + $0xf8] sm:$0xff] %v374_v0 }
  0x2f PF: > { %s13_s14 = sadd.s32 1, %s570_s14   ;;  %s771_s12 = smov %s566_s13 }
  0x30   : > { %p10_p5 = scmp.ge.s32.totalorder %s13_s14, 4   ;;  %s772_s13 = smov %s774_s15 }
  0x32   :  { %12 = sbr.rel (!%p10_p5) target bundleno = 2 (0x2), region = 68 }

// kernel: conv2d_bn_act.2
= control target key start
LH: loop header
LB: loop body
LE: loop exit
PB: predicated region body
PF: predicated region fallthrough
CT: control target
= control target key end

     0   :  { %s1049_s12 = smov 0   ;;  %s1051_s13 = smov 0   ;;  %s1231_s0 = inlined_call_operand.vmem [shape: bf16[512,36], index: 0, kind: input, shape index: {}]   ;;  %s1232_s1 = inlined_call_operand.vmem [shape: bf16[36,128], index: 1, kind: input, shape index: {}]   ;;  %s1233_s2 = inlined_call_operand.vmem [shape: f32[512,128], index: 2, kind: output, shape index: {0}]   ;;  %s1234_s3 = inlined_call_operand.vmem [shape: f32[2,2,128], index: 3, kind: output, shape index: {1}]  }
   0x1   :  { %s1053_s14 = smov 0  }
   0x2 LB: > { %s26_s15 = sadd.s32 1, %s1023_s13  ;;  %p854_p0 = scmp.ge.s32.totalorder %s1027_s14, 1  ;;  %s1027_s14 = sphi %s1053_s14, %s14_s14   ;;  %s1023_s13 = sphi %s1051_s13, %s1236_s13   ;;  %s1019_s12 = sphi %s1049_s12, %s1235_s12  }
   0x3   : > { %p28_p1 = scmp.ge.s32.totalorder %s26_s15, 2  ;;  %p166_p2 = scmp.lt.s32.totalorder %s1027_s14, 3 }
   0x5   : > { %s1238_s15 = smov (%p28_p1, %s26_s15), 0  ;;  %p167_p3 = pnand %p854_p0, %p166_p2 }
   0x6   : > { %v986_v0 = vld [vmem:[%s1232_s1] sm:$0xff] (!%p167_p3)   ;;  %v987_v1 = vld [vmem:[%s1232_s1 + $0x8] sm:$0xff] (!%p167_p3)   ;;  %s855_s20 = sshll.u32 (!%p167_p3), %s1019_s12, 5  ;;  %v988_v2 = vld [vmem:[%s1232_s1 + $0x10] ss:$0 sps:$4 sm:$0x33] (!%p167_p3)  }
   0x7   : > { %170 = sbr.rel (%p167_p3) target bundleno = 312 (0x138), region = 28  ;;  %916 = vmatprep.subr.bf16.mxu0 (!%p167_p3), %v986_v0  ;;  %p205_p4 = scmp.lt.s32.totalorder (!%p167_p3), %s855_s20, 63  ;;  %954 = vmatprep.subr.bf16.mxu1 (!%p167_p3), %v986_v0  ;;  %vm412_vm0 = vcmask (!%p167_p3), 1041408   ;;  %vm363_vm1 = vcmask (!%p167_p3), 293888   ;;  %vm715_vm2 = vcmask (!%p167_p3), 1040384  }
   0x8   : > { %917 = vmatpush3.bf16.msra.mxu0 (!%p167_p3), %v986_v0  ;;  %957 = vmatpush3.bf16.msra.mxu1 (!%p167_p3), %v986_v0  ;;  %v414_v3 = vsel (!%p167_p3), %vm412_vm0, %v988_v2, 0  ;;  %p223_p5 = scmp.lt.s32.totalorder (!%p167_p3), %s1019_s12, 1 }
   0x9   : > { %918 = vmatprep.subr.bf16.mxu0 (!%p167_p3), %v987_v1  ;;  %955 = vmatprep.subr.bf16.mxu1 (!%p167_p3), %v987_v1 }
   0xc   : > { %919 = vmatpush3.bf16.msra.mxu0 (!%p167_p3), %v987_v1  ;;  %958 = vmatpush3.bf16.msra.mxu1 (!%p167_p3), %v987_v1 }
   0xd   : > { %960 = vmatprep.subr.msk.bf16.mxu0 (!%p167_p3), %vm412_vm0, %v988_v2  ;;  %961 = vmatprep.subr.msk.bf16.mxu1 (!%p167_p3), %vm412_vm0, %v988_v2 }
   0xe   : > { %s1240_s20 = smov (!%p205_p4, %s855_s20), 63  ;;  %s1242_s12 = smov (!%p223_p5, %s1019_s12), 1 }
   0xf   : > { %s856_s23 = sshll.u32 %s1240_s20, 2  ;;  %s858_s27 = sshll.u32 %s1240_s20, 3 }
  0x10   : > { %s1085_s26 = scalar_lea.vmem %s1231_s0, %s856_s23  ;;  %921 = vmatpush3.bf16.msra.mxu0 %v414_v3  ;;  %959 = vmatpush3.bf16.msra.mxu1 %v414_v3  ;;  %s1123_s30 = scalar_lea.vmem %s1233_s2, %s858_s27 }
  0x11   : > { %v989_v4 = vld [vmem:[%s1085_s26] sm:$0xff]   ;;  %v990_v5 = vld [vmem:[%s1085_s26 + $0x8] sm:$0xff]   ;;  %v991_v6 = vld [vmem:[%s1085_s26 + $0x10] sm:$0xff]   ;;  %s859_s4 = sshll.u32 %s1242_s12, 1 }
  0x12   : > { %922 = vmatprep.mubr.msk.bf16.mxu0 %vm363_vm1, %v989_v4  ;;  %v992_v7 = vld [vmem:[%s1085_s26 + $0x18] sm:$0xff]   ;;  %v997_v8 = vld [vmem:[%s1085_s26 + $0x40] sm:$0xff]   ;;  %v998_v9 = vld [vmem:[%s1085_s26 + $0x48] sm:$0xff]   ;;  %s229_s7 = scalar_lea.vmem %s1234_s3, %s859_s4 }
  0x13   : > { %923 = vmatmul.mubr.msk.bf16.vlgmr.msra.gmra.mrb[0].mxu0 %vm363_vm1, %v990_v5  ;;  %938 = vmatprep.mubr.msk.bf16.mxu1 %vm363_vm1, %v997_v8  ;;  %v999_v10 = vld [vmem:[%s1085_s26 + $0x50] sm:$0xff]   ;;  %v993_v11 = vld [vmem:[%s1085_s26 + $0x20] sm:$0xff]   ;;  %v1000_v12 = vld [vmem:[%s1085_s26 + $0x58] sm:$0xff]  }
  0x14   : > { %926 = vmatprep.mubr.msk.bf16.mxu0 %vm363_vm1, %v991_v6  ;;  %939 = vmatmul.mubr.msk.bf16.vlgmr.msra.gmra.mrb[0].mxu1 %vm363_vm1, %v998_v9  ;;  %v1001_v13 = vld [vmem:[%s1085_s26 + $0x60] sm:$0xff]   ;;  %v994_v14 = vld [vmem:[%s1085_s26 + $0x28] sm:$0xff]   ;;  %v995_v15 = vld [vmem:[%s1085_s26 + $0x30] sm:$0xff]  }
  0x15   : > { %942 = vmatprep.mubr.msk.bf16.mxu1 %vm363_vm1, %v999_v10  ;;  %v1002_v16 = vld [vmem:[%s1085_s26 + $0x68] sm:$0xff]   ;;  %v1003_v17 = vld [vmem:[%s1085_s26 + $0x70] sm:$0xff]   ;;  %v996_v18 = vld [vmem:[%s1085_s26 + $0x38] sm:$0xff]  }
  0x16   : > { %v1004_v19 = vld [vmem:[%s1085_s26 + $0x78] sm:$0xff]  }
  0x1b   : > { %927 = vmatmul.mubr.msk.bf16.gmra.mrb[4].mxu0 %vm363_vm1, %v992_v7 }
  0x1c   : > { %930 = vmatprep.mubr.msk.bf16.mxu0 %vm363_vm1, %v993_v11  ;;  %943 = vmatmul.mubr.msk.bf16.gmra.mrb[4].mxu1 %vm363_vm1, %v1000_v12 }
  0x1d   : > { %946 = vmatprep.mubr.msk.bf16.mxu1 %vm363_vm1, %v1001_v13 }
  0x23   : > { %931 = vmatmul.mubr.msk.bf16.gmra.mrb[8].mxu0 %vm363_vm1, %v994_v14 }
  0x24   : > { %934 = vmatprep.mubr.msk.bf16.mxu0 %vm363_vm1, %v995_v15  ;;  %947 = vmatmul.mubr.msk.bf16.gmra.mrb[8].mxu1 %vm363_vm1, %v1002_v16 }
  0x25   : > { %950 = vmatprep.mubr.msk.bf16.mxu1 %vm363_vm1, %v1003_v17 }
  0x2b   : > { %935 = vmatmul.mubr.msk.bf16.gmra.mrb[12].mxu0 %vm363_vm1, %v996_v18 }
  0x2c   : > { %951 = vmatmul.mubr.msk.bf16.gmra.mrb[12].mxu1 %vm363_vm1, %v1004_v19 }
  0xe6   : > { %v924_v20 = vpop.f32.mrb[0].mxu0 }
  0xe7   : > { %579 = vst [vmem:[%s1123_s30 + $0x10] sm:$0xff] %v924_v20  ;;  %v450_v21 = vpop.f32.mrb[1].mxu0  ;;  %v1129_v27 = vpop.f32.mrb[0].mxu1  ;;  %v648_v28 = vmul.f32 %v924_v20, %v924_v20 }
  0xe8   : > { %577 = vst [vmem:[%s1123_s30] sm:$0xff] %v450_v21  ;;  %v925_v22 = vpop.f32.mrb[2].mxu0  ;;  %v646_v24 = vmul.f32 %v450_v21, %v450_v21  ;;  %595 = vst [vmem:[%s1123_s30 + $0x90] sm:$0xff] %v1129_v27  ;;  %v1133_v31 = vpop.f32.mrb[1].mxu1 }
  0xe9   : > { %580 = vst [vmem:[%s1123_s30 + $0x18] sm:$0xff] %v925_v22  ;;  %v453_v23 = vpop.f32.mrb[3].mxu0  ;;  %593 = vst [vmem:[%s1123_s30 + $0x80] sm:$0xff] %v1133_v31  ;;  %v1137_v32 = vpop.f32.mrb[2].mxu1  ;;  %v649_v33 = vmul.f32 %v925_v22, %v925_v22 }
  0xea   : > { %578 = vst [vmem:[%s1123_s30 + $0x8] sm:$0xff] %v453_v23  ;;  %v609_v25 = vadd.f32 %v453_v23, %v450_v21  ;;  %v647_v26 = vmul.f32 %v453_v23, %v453_v23  ;;  %596 = vst [vmem:[%s1123_s30 + $0x98] sm:$0xff] %v1137_v32  ;;  %v1141_v37 = vpop.f32.mrb[3].mxu1 }
  0xeb   : > { %594 = vst [vmem:[%s1123_s30 + $0x88] sm:$0xff] %v1141_v37 }
  0xec   : > { %v610_v29 = vadd.f32 %v924_v20, %v609_v25  ;;  %v678_v30 = vadd.f32 %v647_v26, %v646_v24 }
  0xee   : > { %v679_v34 = vadd.f32 %v678_v30, %v648_v28  ;;  %v928_v35 = vpop.f32.mrb[4].mxu0  ;;  %v611_v36 = vadd.f32 %v925_v22, %v610_v29 }
  0xef   : > { %583 = vst [vmem:[%s1123_s30 + $0x30] sm:$0xff] %v928_v35  ;;  %v466_v38 = vpop.f32.mrb[5].mxu0  ;;  %v1149_v47 = vpop.f32.mrb[4].mxu1  ;;  %v652_v48 = vmul.f32 %v928_v35, %v928_v35 }
  0xf0   : > { %581 = vst [vmem:[%s1123_s30 + $0x20] sm:$0xff] %v466_v38  ;;  %v612_v39 = vadd.f32 %v611_v36, %v466_v38  ;;  %v650_v40 = vmul.f32 %v466_v38, %v466_v38  ;;  %v680_v41 = vadd.f32 %v679_v34, %v649_v33  ;;  %v929_v42 = vpop.f32.mrb[6].mxu0  ;;  %599 = vst [vmem:[%s1123_s30 + $0xb0] sm:$0xff] %v1149_v47  ;;  %v1153_v51 = vpop.f32.mrb[5].mxu1 }
  0xf1   : > { %584 = vst [vmem:[%s1123_s30 + $0x38] sm:$0xff] %v929_v42  ;;  %v469_v43 = vpop.f32.mrb[7].mxu0  ;;  %597 = vst [vmem:[%s1123_s30 + $0xa0] sm:$0xff] %v1153_v51  ;;  %v1157_v52 = vpop.f32.mrb[6].mxu1  ;;  %v653_v53 = vmul.f32 %v929_v42, %v929_v42 }
  0xf2   : > { %v681_v44 = vadd.f32 %v680_v41, %v650_v40  ;;  %582 = vst [vmem:[%s1123_s30 + $0x28] sm:$0xff] %v469_v43  ;;  %v613_v45 = vadd.f32 %v612_v39, %v469_v43  ;;  %v651_v46 = vmul.f32 %v469_v43, %v469_v43  ;;  %600 = vst [vmem:[%s1123_s30 + $0xb8] sm:$0xff] %v1157_v52  ;;  %v1161_v57 = vpop.f32.mrb[7].mxu1 }
  0xf3   : > { %598 = vst [vmem:[%s1123_s30 + $0xa8] sm:$0xff] %v1161_v57  ;;  %v664_v43 = vmul.f32 %v1129_v27, %v1129_v27 }
  0xf4   : > { %v614_v49 = vadd.f32 %v928_v35, %v613_v45  ;;  %v682_v50 = vadd.f32 %v681_v44, %v651_v46  ;;  %v662_v35 = vmul.f32 %v1133_v31, %v1133_v31  ;;  %v665_v46 = vmul.f32 %v1137_v32, %v1137_v32 }
  0xf6   : > { %v683_v54 = vadd.f32 %v682_v50, %v652_v48  ;;  %v932_v55 = vpop.f32.mrb[8].mxu0  ;;  %v615_v56 = vadd.f32 %v929_v42, %v614_v49  ;;  %v663_v42 = vmul.f32 %v1141_v37, %v1141_v37 }
  0xf7   : > { %587 = vst [vmem:[%s1123_s30 + $0x50] sm:$0xff] %v932_v55  ;;  %v482_v58 = vpop.f32.mrb[9].mxu0  ;;  %v1169_v3 = vpop.f32.mrb[8].mxu1  ;;  %v656_v4 = vmul.f32 %v932_v55, %v932_v55 }
  0xf8   : > { %585 = vst [vmem:[%s1123_s30 + $0x40] sm:$0xff] %v482_v58  ;;  %v616_v59 = vadd.f32 %v615_v56, %v482_v58  ;;  %v654_v60 = vmul.f32 %v482_v58, %v482_v58  ;;  %v684_v61 = vadd.f32 %v683_v54, %v653_v53  ;;  %v933_v62 = vpop.f32.mrb[10].mxu0  ;;  %603 = vst [vmem:[%s1123_s30 + $0xd0] sm:$0xff] %v1169_v3  ;;  %v546_v7 = vpop.f32.mrb[9].mxu1 }
  0xf9   : > { %588 = vst [vmem:[%s1123_s30 + $0x58] sm:$0xff] %v933_v62  ;;  %v485_v63 = vpop.f32.mrb[11].mxu0  ;;  %601 = vst [vmem:[%s1123_s30 + $0xc0] sm:$0xff] %v546_v7  ;;  %v1174_v8 = vpop.f32.mrb[10].mxu1  ;;  %v657_v9 = vmul.f32 %v933_v62, %v933_v62 }
  0xfa   : > { %v685_v0 = vadd.f32 %v684_v61, %v654_v60  ;;  %586 = vst [vmem:[%s1123_s30 + $0x48] sm:$0xff] %v485_v63  ;;  %v617_v1 = vadd.f32 %v616_v59, %v485_v63  ;;  %v655_v2 = vmul.f32 %v485_v63, %v485_v63  ;;  %604 = vst [vmem:[%s1123_s30 + $0xd8] sm:$0xff] %v1174_v8  ;;  %v549_v13 = vpop.f32.mrb[11].mxu1 }
  0xfb   : > { %602 = vst [vmem:[%s1123_s30 + $0xc8] sm:$0xff] %v549_v13 }
  0xfc   : > { %v618_v5 = vadd.f32 %v932_v55, %v617_v1  ;;  %v686_v6 = vadd.f32 %v685_v0, %v655_v2  ;;  %v667_v55 = vmul.f32 %v1161_v57, %v1161_v57  ;;  %v671_v1 = vmul.f32 %v549_v13, %v549_v13 }
  0xfe   : > { %v687_v10 = vadd.f32 %v686_v6, %v656_v4  ;;  %v936_v11 = vpop.f32.mrb[12].mxu0  ;;  %v619_v12 = vadd.f32 %v933_v62, %v618_v5 }
  0xff   : > { %591 = vst [vmem:[%s1123_s30 + $0x70] sm:$0xff] %v936_v11  ;;  %v498_v14 = vpop.f32.mrb[13].mxu0  ;;  %v952_v23 = vpop.f32.mrb[12].mxu1  ;;  %v660_v24 = vmul.f32 %v936_v11, %v936_v11 }
 0x100   : > { %589 = vst [vmem:[%s1123_s30 + $0x60] sm:$0xff] %v498_v14  ;;  %v620_v15 = vadd.f32 %v619_v12, %v498_v14  ;;  %v658_v16 = vmul.f32 %v498_v14, %v498_v14  ;;  %v688_v17 = vadd.f32 %v687_v10, %v657_v9  ;;  %v937_v18 = vpop.f32.mrb[14].mxu0  ;;  %607 = vst [vmem:[%s1123_s30 + $0xf0] sm:$0xff] %v952_v23  ;;  %v562_v28 = vpop.f32.mrb[13].mxu1 }
 0x101   : > { %592 = vst [vmem:[%s1123_s30 + $0x78] sm:$0xff] %v937_v18  ;;  %v501_v19 = vpop.f32.mrb[15].mxu0  ;;  %605 = vst [vmem:[%s1123_s30 + $0xe0] sm:$0xff] %v562_v28  ;;  %v953_v29 = vpop.f32.mrb[14].mxu1  ;;  %v661_v30 = vmul.f32 %v937_v18, %v937_v18 }
 0x102   : > { %v689_v20 = vadd.f32 %v688_v17, %v658_v16  ;;  %590 = vst [vmem:[%s1123_s30 + $0x68] sm:$0xff] %v501_v19  ;;  %v621_v21 = vadd.f32 %v620_v15, %v501_v19  ;;  %v659_v22 = vmul.f32 %v501_v19, %v501_v19  ;;  %608 = vst [vmem:[%s1123_s30 + $0xf8] sm:$0xff] %v953_v29  ;;  %v565_v36 = vpop.f32.mrb[15].mxu1 }
 0x103   : > { %606 = vst [vmem:[%s1123_s30 + $0xe8] sm:$0xff] %v565_v36  ;;  %v675_v12 = vmul.f32 %v565_v36, %v565_v36  ;;  %v677_v16 = vmul.f32 %v953_v29, %v953_v29 }
 0x104   : > { %v622_v25 = vadd.f32 %v936_v11, %v621_v21  ;;  %v690_v26 = vadd.f32 %v689_v20, %v659_v22 }
 0x106   : > { %v691_v33 = vadd.f32 %v690_v26, %v660_v24  ;;  %v623_v34 = vadd.f32 %v937_v18, %v622_v25 }
 0x108   : > { %v624_v38 = vadd.f32 %v623_v34, %v1133_v31  ;;  %v692_v39 = vadd.f32 %v691_v33, %v661_v30  ;;  %v666_v31 = vmul.f32 %v1153_v51, %v1153_v51 }
 0x10a   : > { %v693_v40 = vadd.f32 %v692_v39, %v662_v35  ;;  %v625_v41 = vadd.f32 %v624_v38, %v1141_v37 }
 0x10c   : > { %v626_v44 = vadd.f32 %v1129_v27, %v625_v41  ;;  %v694_v45 = vadd.f32 %v693_v40, %v663_v42  ;;  %v668_v27 = vmul.f32 %v1149_v47, %v1149_v47 }
 0x10e   : > { %v695_v48 = vadd.f32 %v694_v45, %v664_v43  ;;  %v627_v49 = vadd.f32 %v1137_v32, %v626_v44  ;;  %v669_v32 = vmul.f32 %v1157_v52, %v1157_v52 }
 0x110   : > { %v628_v50 = vadd.f32 %v627_v49, %v1153_v51  ;;  %v696_v53 = vadd.f32 %v695_v48, %v665_v46  ;;  %v670_v51 = vmul.f32 %v546_v7, %v546_v7 }
 0x112   : > { %v697_v54 = vadd.f32 %v696_v53, %v666_v31  ;;  %v629_v37 = vadd.f32 %v628_v50, %v1161_v57  ;;  %v672_v57 = vmul.f32 %v1169_v3, %v1169_v3 }
 0x114   : > { %v630_v56 = vadd.f32 %v1149_v47, %v629_v37  ;;  %v698_v58 = vadd.f32 %v697_v54, %v667_v55  ;;  %v673_v47 = vmul.f32 %v1174_v8, %v1174_v8 }
 0x116   : > { %v699_v59 = vadd.f32 %v698_v58, %v668_v27  ;;  %v631_v60 = vadd.f32 %v1157_v52, %v630_v56  ;;  %v674_v52 = vmul.f32 %v562_v28, %v562_v28 }
 0x118   : > { %v632_v61 = vadd.f32 %v631_v60, %v546_v7  ;;  %v700_v62 = vadd.f32 %v699_v59, %v669_v32 }
 0x11a   : > { %v701_v63 = vadd.f32 %v700_v62, %v670_v51  ;;  %v633_v0 = vadd.f32 %v632_v61, %v549_v13  ;;  %v676_v13 = vmul.f32 %v952_v23, %v952_v23 }
 0x11c   : > { %v634_v2 = vadd.f32 %v1169_v3, %v633_v0  ;;  %v702_v4 = vadd.f32 %v701_v63, %v671_v1 }
 0x11e   : > { %v703_v5 = vadd.f32 %v702_v4, %v672_v57  ;;  %v635_v6 = vadd.f32 %v1174_v8, %v634_v2 }
 0x120   : > { %v636_v9 = vadd.f32 %v635_v6, %v562_v28  ;;  %v704_v7 = vadd.f32 %v703_v5, %v673_v47 }
 0x122   : > { %v705_v10 = vadd.f32 %v704_v7, %v674_v52  ;;  %v637_v11 = vadd.f32 %v636_v9, %v565_v36 }
 0x124   : > { %v638_v14 = vadd.f32 %v952_v23, %v637_v11  ;;  %v706_v15 = vadd.f32 %v705_v10, %v675_v12 }
 0x126   : > { %v639_v3 = vadd.f32 %v953_v29, %v638_v14  ;;  %v707_v17 = vadd.f32 %v706_v15, %v676_v13 }
 0x128   : > { %v640_v18 = vrot.slane %v639_v3, 4  ;;  %v708_v19 = vadd.f32 %v707_v17, %v677_v16 }
 0x12a   : > { %v641_v20 = vadd.f32 %v640_v18, %v639_v3  ;;  %v709_v21 = vrot.slane %v708_v19, 4 }
 0x12c   : > { %v642_v22 = vrot.slane %v641_v20, 2  ;;  %v710_v8 = vadd.f32 %v709_v21, %v708_v19 }
 0x12e   : > { %v643_v24 = vadd.f32 %v642_v22, %v641_v20  ;;  %v711_v25 = vrot.slane %v710_v8, 2 }
 0x130   : > { %v644_v26 = vrot.slane %v643_v24, 1  ;;  %v712_v28 = vadd.f32 %v711_v25, %v710_v8 }
 0x132   : > { %v713_v30 = vrot.slane %v712_v28, 1  ;;  %v645_v23 = vadd.f32 %v644_v26, %v643_v24 }
 0x134   : > { %v714_v29 = vadd.f32 %v713_v30, %v712_v28 }
 0x136   : > { %v716_v33 = vsel %vm715_vm2, %v645_v23, %v714_v29 }
 0x137   : > { %717 = vst [vmem:[%s229_s7] sm:$0x3] %v716_v33 }
 0x138 PF: > { %s14_s14 = sadd.s32 1, %s1027_s14   ;;  %s1235_s12 = smov %s1023_s13 }
 0x139   : > { %p11_p6 = scmp.ge.s32.totalorder %s14_s14, 4   ;;  %s1236_s13 = smov %s1238_s15 }
 0x13b   :  { %13 = sbr.rel (!%p11_p6) target bundleno = 2 (0x2), region = 73 }

</bundles_post_ra>
